<compile_context>
chip_gen: v6e
topology: v6e:2x2x1
jax: 0.10.0
libtpu: 0.0.40
codegen_flags: <defaults>
</compile_context>

<pallas_src>
import functools

import jax
import jax.numpy as jnp
from jax.experimental import pallas as pl
from jax.experimental.pallas import tpu as pltpu


LANE = 128


def _round_up(x, m):
    return ((x + m - 1) // m) * m


# -----------------------------------------------------------------------------
# Fused kernel: both encoder branches + cross-attention fusion, single invocation
#   patches_ref: (R, PDp)      bf16   R = N*S (flattened rows)
#   we_ref:      (PDp, 2*Dp)   bf16   [scene_w | senti_w], zero padded
#   be_ref:      (1, 2*Dp)     f32    [scene_b | senti_b], zero padded
#   wq_ref:      (Dp, Dp)      bf16
#   wkv_ref:     (Dp, 2*Dp)    bf16   [wk | wv]
#   wo_ref:      (Dp, Dp)      bf16
#   out_ref:     (R, Dp)       f32    visual_encoder (padded lanes beyond D are 0)
# -----------------------------------------------------------------------------
def fused_sentivisual_kernel(patches_ref, we_ref, be_ref, wq_ref, wkv_ref,
                             wo_ref, out_ref, *, n_batch, seq, d_model):
    Dp = wq_ref.shape[0]

    # --- both UniImageEncoder branches as ONE matmul (bf16 in, f32 accumulate) ---
    tok = jnp.dot(patches_ref[...], we_ref[...],
                  preferred_element_type=jnp.float32) + be_ref[...]   # (R, 2Dp) f32
    scene = tok[:, :Dp]                                               # (R, Dp) f32
    senti = tok[:, Dp:]                                               # (R, Dp) f32
    # scene_cls / senti_cls are discarded in forward_self_attention -> not computed.

    # --- FusionModel: cross-attention, Q from senti, K/V from scene ---
    senti_b = senti.astype(jnp.bfloat16)
    scene_b = scene.astype(jnp.bfloat16)
    q = jnp.dot(senti_b, wq_ref[...], preferred_element_type=jnp.float32)
    kv = jnp.dot(scene_b, wkv_ref[...], preferred_element_type=jnp.float32)
    k = kv[:, :Dp]
    v = kv[:, Dp:]

    qb = q.reshape(n_batch, seq, Dp).astype(jnp.bfloat16)
    kb = k.reshape(n_batch, seq, Dp).astype(jnp.bfloat16)
    vb = v.reshape(n_batch, seq, Dp).astype(jnp.bfloat16)

    # scores: contract last dims of q and k directly (no materialized transpose).
    scale = 1.0 / (d_model ** 0.5)
    scores = jnp.einsum("bqd,bkd->bqk", qb, kb,
                        preferred_element_type=jnp.float32) * scale   # (N,S,S) f32

    # Softmax in f32 (safe on v5e); divide moved to EUP via approx reciprocal.
    m = jnp.max(scores, axis=-1, keepdims=True)
    p = jnp.exp(scores - m)
    denom = jnp.sum(p, axis=-1, keepdims=True)
    attn = p * pl.reciprocal(denom, approx=True)

    ctx = jnp.einsum("bqk,bkd->bqd", attn.astype(jnp.bfloat16), vb,
                     preferred_element_type=jnp.float32)              # (N,S,Dp) f32

    # Output projection + residual (residual in f32).
    ctx_flat = ctx.reshape(n_batch * seq, Dp).astype(jnp.bfloat16)
    out = jnp.dot(ctx_flat, wo_ref[...],
                  preferred_element_type=jnp.float32) + senti
    out_ref[...] = out


# -----------------------------------------------------------------------------
# Wrapper: patch extraction + lane-dense padding (pure-JAX glue), single kernel call
# -----------------------------------------------------------------------------
def extract_patches(image, patch):
    """NCHW image -> (N, S, C*patch*patch) patch tokens (layout plumbing only)."""
    N, C, H, W = image.shape
    hp, wp = H // patch, W // patch
    x = image.reshape(N, C, hp, patch, wp, patch)
    x = x.transpose(0, 2, 4, 1, 3, 5)                 # (N, hp, wp, C, p, p)
    return x.reshape(N, hp * wp, C * patch * patch)


def senti_visual_model_forward(image, params, patch):
    N, _, _, _ = image.shape
    patches = extract_patches(image, patch)           # (N, S, Pd) f32
    _, S, Pd = patches.shape
    D = params["wq"].shape[0]

    R = N * S
    assert R % 8 == 0 and S % 8 == 0, "row counts must be sublane-aligned"
    PDp = _round_up(Pd, LANE)
    Dp = _round_up(D, LANE)

    def pad_bf16(w, rows, cols):
        return jnp.pad(w.astype(jnp.bfloat16),
                       ((0, rows - w.shape[0]), (0, cols - w.shape[1])))

    # Lane-dense, zero-padded, bf16 operands (padding columns/rows contribute 0).
    patches_p = pad_bf16(patches.reshape(R, Pd), R, PDp)            # (R, PDp)
    w_embed = jnp.concatenate(                                      # (PDp, 2Dp)
        [pad_bf16(params["scene_w"], PDp, Dp),
         pad_bf16(params["senti_w"], PDp, Dp)], axis=1)
    b_embed = jnp.concatenate(                                      # (1, 2Dp) f32
        [jnp.pad(params["scene_b"], ((0, 0), (0, Dp - D))),
         jnp.pad(params["senti_b"], ((0, 0), (0, Dp - D)))], axis=1)
    wq_p = pad_bf16(params["wq"], Dp, Dp)
    wkv_p = jnp.concatenate(
        [pad_bf16(params["wk"], Dp, Dp), pad_bf16(params["wv"], Dp, Dp)], axis=1)
    wo_p = pad_bf16(params["wo"], Dp, Dp)

    kernel = functools.partial(fused_sentivisual_kernel,
                               n_batch=N, seq=S, d_model=D)

    out_p = pl.pallas_call(
        kernel,
        out_shape=jax.ShapeDtypeStruct((R, Dp), jnp.float32),
        grid_spec=pltpu.PrefetchScalarGridSpec(
            num_scalar_prefetch=0,
            grid=(1,),
            in_specs=[
                pl.BlockSpec((R, PDp), lambda i: (0, 0)),
                pl.BlockSpec((PDp, 2 * Dp), lambda i: (0, 0)),
                pl.BlockSpec((1, 2 * Dp), lambda i: (0, 0)),
                pl.BlockSpec((Dp, Dp), lambda i: (0, 0)),
                pl.BlockSpec((Dp, 2 * Dp), lambda i: (0, 0)),
                pl.BlockSpec((Dp, Dp), lambda i: (0, 0)),
            ],
            out_specs=pl.BlockSpec((R, Dp), lambda i: (0, 0)),
        ),
        compiler_params=pltpu.CompilerParams(
            dimension_semantics=("arbitrary",),
            vmem_limit_bytes=32 * 1024 * 1024),   # explicit budget (v7x-safe)
    )(patches_p, w_embed, b_embed, wq_p, wkv_p, wo_p)

    # Un-pad the lane dimension: (R, Dp) -> (N, S, D)
    return out_p.reshape(N, S, Dp)[:, :, :D]


# -----------------------------------------------------------------------------
# Pure-JAX reference (mirrors the bf16-operand / f32-accumulate matmul policy)
# -----------------------------------------------------------------------------
def reference_forward(image, params, patch):
    patches = extract_patches(image, patch)

    def b16(x):
        return x.astype(jnp.bfloat16)

    def enc(w, b):
        return jnp.einsum("nsp,pd->nsd", b16(patches), b16(w),
                          preferred_element_type=jnp.float32) + b

    scene = enc(params["scene_w"], params["scene_b"])
    senti = enc(params["senti_w"], params["senti_b"])
    D = params["wq"].shape[0]
    q = jnp.einsum("nsd,de->nse", b16(senti), b16(params["wq"]),
                   preferred_element_type=jnp.float32)
    k = jnp.einsum("nsd,de->nse", b16(scene), b16(params["wk"]),
                   preferred_element_type=jnp.float32)
    v = jnp.einsum("nsd,de->nse", b16(scene), b16(params["wv"]),
                   preferred_element_type=jnp.float32)
    scores = jnp.einsum("nqd,nkd->nqk", b16(q), b16(k),
                        preferred_element_type=jnp.float32) / (D ** 0.5)
    attn = jax.nn.softmax(scores, axis=-1)
    ctx = jnp.einsum("nqk,nkd->nqd", b16(attn), b16(v),
                     preferred_element_type=jnp.float32)
    out = jnp.einsum("nsd,de->nse", b16(ctx), b16(params["wo"]),
                     preferred_element_type=jnp.float32) + senti
    return out


if __name__ == "__main__":
    # Small shapes consistent with the forward: NCHW image.
    N, C, H, W = 2, 4, 16, 16
    PATCH = 4
    S = (H // PATCH) * (W // PATCH)          # 16 tokens
    PD = C * PATCH * PATCH                   # 64
    D = 32                                   # encoder hidden dim

    key = jax.random.PRNGKey(0)
    keys = jax.random.split(key, 9)
    image = jax.random.normal(keys[0], (N, C, H, W), dtype=jnp.float32)

    params = {
        "scene_w": jax.random.normal(keys[1], (PD, D), jnp.float32) * 0.05,
        "scene_b": jax.random.normal(keys[2], (1, D), jnp.float32) * 0.01,
        "senti_w": jax.random.normal(keys[3], (PD, D), jnp.float32) * 0.05,
        "senti_b": jax.random.normal(keys[4], (1, D), jnp.float32) * 0.01,
        "wq": jax.random.normal(keys[5], (D, D), jnp.float32) * 0.05,
        "wk": jax.random.normal(keys[6], (D, D), jnp.float32) * 0.05,
        "wv": jax.random.normal(keys[7], (D, D), jnp.float32) * 0.05,
        "wo": jax.random.normal(keys[8], (D, D), jnp.float32) * 0.05,
    }

    out = jax.block_until_ready(senti_visual_model_forward(image, params, PATCH))
    ref = reference_forward(image, params, PATCH)

    assert out.shape == (N, S, D)
    # bf16 MXU operands + approx-reciprocal softmax => relaxed tolerance vs f32.
    assert jnp.allclose(out, ref, atol=2e-2, rtol=2e-2), "mismatch vs reference"

    print("KERNEL_OK")
</pallas_src>

<mosaic_0001>
module attributes {stable_mosaic.version = 11 : i64} {
  func.func @fused_sentivisual_kernel(%arg0: i32, %arg1: memref<32x128xbf16, #tpu.memory_space<vmem>>, %arg2: memref<128x256xbf16, #tpu.memory_space<vmem>>, %arg3: memref<1x256xf32, #tpu.memory_space<vmem>>, %arg4: memref<128x128xbf16, #tpu.memory_space<vmem>>, %arg5: memref<128x256xbf16, #tpu.memory_space<vmem>>, %arg6: memref<128x128xbf16, #tpu.memory_space<vmem>>, %arg7: memref<32x128xf32, #tpu.memory_space<vmem>>) attributes {dimension_semantics = [#tpu.dimension_semantics<arbitrary>], iteration_bounds = array<i64: 1>, scalar_prefetch = 0 : i64, scratch_operands = 0 : i64, tpu.core_type = #tpu.core_type<tc>, window_params = [{pipeline_mode = #tpu.pipeline_mode<synchronous>, transform_indices = @transform_0, window_bounds = array<i64: 32, 128>}, {pipeline_mode = #tpu.pipeline_mode<synchronous>, transform_indices = @transform_1, window_bounds = array<i64: 128, 256>}, {pipeline_mode = #tpu.pipeline_mode<synchronous>, transform_indices = @transform_2, window_bounds = array<i64: 1, 256>}, {pipeline_mode = #tpu.pipeline_mode<synchronous>, transform_indices = @transform_3, window_bounds = array<i64: 128, 128>}, {pipeline_mode = #tpu.pipeline_mode<synchronous>, transform_indices = @transform_4, window_bounds = array<i64: 128, 256>}, {pipeline_mode = #tpu.pipeline_mode<synchronous>, transform_indices = @transform_5, window_bounds = array<i64: 128, 128>}, {pipeline_mode = #tpu.pipeline_mode<synchronous>, transform_indices = @transform_6, window_bounds = array<i64: 32, 128>}]} {
    %c0 = arith.constant 0 : index
    %c0_0 = arith.constant 0 : index
    %0 = vector.load %arg1[%c0, %c0_0] : memref<32x128xbf16, #tpu.memory_space<vmem>>, vector<32x128xbf16>
    %c0_1 = arith.constant 0 : index
    %c0_2 = arith.constant 0 : index
    %1 = vector.load %arg2[%c0_1, %c0_2] : memref<128x256xbf16, #tpu.memory_space<vmem>>, vector<128x256xbf16>
    %cst = arith.constant dense<0.000000e+00> : vector<32x256xf32>
    %2 = tpu.matmul %0, %1, %cst {dimension_numbers = #tpu.dot_dimension_numbers<[1], [0], [0], [1], [0, 0, 1, 1], [], []>} : vector<32x128xbf16>, vector<128x256xbf16>, vector<32x256xf32> -> vector<32x256xf32>
    %c0_3 = arith.constant 0 : index
    %c0_4 = arith.constant 0 : index
    %3 = vector.load %arg3[%c0_3, %c0_4] : memref<1x256xf32, #tpu.memory_space<vmem>>, vector<1x256xf32>
    %4 = vector.broadcast %3 : vector<1x256xf32> to vector<32x256xf32>
    %5 = arith.addf %2, %4 : vector<32x256xf32>
    %6 = vector.extract_strided_slice %5 {offsets = [0, 0], sizes = [32, 128], strides = [1, 1]} : vector<32x256xf32> to vector<32x128xf32>
    %7 = vector.extract_strided_slice %5 {offsets = [0, 128], sizes = [32, 128], strides = [1, 1]} : vector<32x256xf32> to vector<32x128xf32>
    %8 = arith.truncf %7 : vector<32x128xf32> to vector<32x128xbf16>
    %9 = arith.truncf %6 : vector<32x128xf32> to vector<32x128xbf16>
    %c0_5 = arith.constant 0 : index
    %c0_6 = arith.constant 0 : index
    %10 = vector.load %arg4[%c0_5, %c0_6] : memref<128x128xbf16, #tpu.memory_space<vmem>>, vector<128x128xbf16>
    %cst_7 = arith.constant dense<0.000000e+00> : vector<32x128xf32>
    %11 = tpu.matmul %8, %10, %cst_7 {dimension_numbers = #tpu.dot_dimension_numbers<[1], [0], [0], [1], [0, 0, 1, 1], [], []>} : vector<32x128xbf16>, vector<128x128xbf16>, vector<32x128xf32> -> vector<32x128xf32>
    %c0_8 = arith.constant 0 : index
    %c0_9 = arith.constant 0 : index
    %12 = vector.load %arg5[%c0_8, %c0_9] : memref<128x256xbf16, #tpu.memory_space<vmem>>, vector<128x256xbf16>
    %cst_10 = arith.constant dense<0.000000e+00> : vector<32x256xf32>
    %13 = tpu.matmul %9, %12, %cst_10 {dimension_numbers = #tpu.dot_dimension_numbers<[1], [0], [0], [1], [0, 0, 1, 1], [], []>} : vector<32x128xbf16>, vector<128x256xbf16>, vector<32x256xf32> -> vector<32x256xf32>
    %14 = vector.extract_strided_slice %13 {offsets = [0, 0], sizes = [32, 128], strides = [1, 1]} : vector<32x256xf32> to vector<32x128xf32>
    %15 = vector.extract_strided_slice %13 {offsets = [0, 128], sizes = [32, 128], strides = [1, 1]} : vector<32x256xf32> to vector<32x128xf32>
    %16 = vector.shape_cast %11 : vector<32x128xf32> to vector<2x16x128xf32>
    %17 = arith.truncf %16 : vector<2x16x128xf32> to vector<2x16x128xbf16>
    %18 = vector.shape_cast %14 : vector<32x128xf32> to vector<2x16x128xf32>
    %19 = arith.truncf %18 : vector<2x16x128xf32> to vector<2x16x128xbf16>
    %20 = vector.shape_cast %15 : vector<32x128xf32> to vector<2x16x128xf32>
    %21 = arith.truncf %20 : vector<2x16x128xf32> to vector<2x16x128xbf16>
    "tpu.trace_start"() <{level = 10 : i32, message = "bqd,bkd->bqk"}> : () -> ()
    %cst_11 = arith.constant dense<0.000000e+00> : vector<2x16x16xf32>
    %22 = tpu.matmul %17, %19, %cst_11 {dimension_numbers = #tpu.dot_dimension_numbers<[2], [2], [1], [1], [0, 0, 0, 1, 1, 1], [0], [0]>} : vector<2x16x128xbf16>, vector<2x16x128xbf16>, vector<2x16x16xf32> -> vector<2x16x16xf32>
    "tpu.trace_stop"() : () -> ()
    %cst_12 = arith.constant 0.176776692 : f32
    %23 = vector.broadcast %cst_12 : f32 to vector<2x16x16xf32>
    %24 = arith.mulf %22, %23 : vector<2x16x16xf32>
    %cst_13 = arith.constant dense<0xFF800000> : vector<2x16xf32>
    %25 = vector.multi_reduction <maximumf>, %24, %cst_13 [2] : vector<2x16x16xf32> to vector<2x16xf32>
    %26 = vector.shape_cast %25 : vector<2x16xf32> to vector<2x16x1xf32>
    %27 = vector.broadcast %26 : vector<2x16x1xf32> to vector<2x16x16xf32>
    %28 = arith.subf %24, %27 : vector<2x16x16xf32>
    %29 = math.exp %28 : vector<2x16x16xf32>
    %cst_14 = arith.constant dense<0.000000e+00> : vector<2x16xf32>
    %30 = vector.multi_reduction <add>, %29, %cst_14 [2] : vector<2x16x16xf32> to vector<2x16xf32>
    %31 = vector.shape_cast %30 : vector<2x16xf32> to vector<2x16x1xf32>
    %32 = tpu.reciprocal %31 {approx = true} : vector<2x16x1xf32> -> vector<2x16x1xf32>
    %33 = vector.broadcast %32 : vector<2x16x1xf32> to vector<2x16x16xf32>
    %34 = arith.mulf %29, %33 : vector<2x16x16xf32>
    %35 = arith.truncf %34 : vector<2x16x16xf32> to vector<2x16x16xbf16>
    "tpu.trace_start"() <{level = 10 : i32, message = "bqk,bkd->bqd"}> : () -> ()
    %cst_15 = arith.constant dense<0.000000e+00> : vector<2x16x128xf32>
    %36 = tpu.matmul %35, %21, %cst_15 {dimension_numbers = #tpu.dot_dimension_numbers<[2], [1], [1], [2], [0, 0, 0, 1, 1, 2], [0], [0]>} : vector<2x16x16xbf16>, vector<2x16x128xbf16>, vector<2x16x128xf32> -> vector<2x16x128xf32>
    "tpu.trace_stop"() : () -> ()
    %37 = vector.shape_cast %36 : vector<2x16x128xf32> to vector<32x128xf32>
    %38 = arith.truncf %37 : vector<32x128xf32> to vector<32x128xbf16>
    %c0_16 = arith.constant 0 : index
    %c0_17 = arith.constant 0 : index
    %39 = vector.load %arg6[%c0_16, %c0_17] : memref<128x128xbf16, #tpu.memory_space<vmem>>, vector<128x128xbf16>
    %cst_18 = arith.constant dense<0.000000e+00> : vector<32x128xf32>
    %40 = tpu.matmul %38, %39, %cst_18 {dimension_numbers = #tpu.dot_dimension_numbers<[1], [0], [0], [1], [0, 0, 1, 1], [], []>} : vector<32x128xbf16>, vector<128x128xbf16>, vector<32x128xf32> -> vector<32x128xf32>
    %41 = arith.addf %40, %7 : vector<32x128xf32>
    %c0_19 = arith.constant 0 : index
    %c0_20 = arith.constant 0 : index
    %42 = vector.load %arg7[%c0_19, %c0_20] : memref<32x128xf32, #tpu.memory_space<vmem>>, vector<32x128xf32>
    tpu.vector_store %arg7[%c0_19, %c0_20], %41 {strides = array<i32>} : memref<32x128xf32, #tpu.memory_space<vmem>>, vector<32x128xf32>,
    return
  }
  func.func @transform_0(%arg0: i32) -> (i32, i32) {
    %c0_i32 = arith.constant 0 : i32
    %c0_i32_0 = arith.constant 0 : i32
    %c0_i32_1 = arith.constant 0 : i32
    return %c0_i32, %c0_i32_0 : i32, i32
  }
  func.func @transform_1(%arg0: i32) -> (i32, i32) {
    %c0_i32 = arith.constant 0 : i32
    %c0_i32_0 = arith.constant 0 : i32
    %c0_i32_1 = arith.constant 0 : i32
    return %c0_i32, %c0_i32_0 : i32, i32
  }
  func.func @transform_2(%arg0: i32) -> (i32, i32) {
    %c0_i32 = arith.constant 0 : i32
    %c0_i32_0 = arith.constant 0 : i32
    %c0_i32_1 = arith.constant 0 : i32
    return %c0_i32, %c0_i32_0 : i32, i32
  }
  func.func @transform_3(%arg0: i32) -> (i32, i32) {
    %c0_i32 = arith.constant 0 : i32
    %c0_i32_0 = arith.constant 0 : i32
    %c0_i32_1 = arith.constant 0 : i32
    return %c0_i32, %c0_i32_0 : i32, i32
  }
  func.func @transform_4(%arg0: i32) -> (i32, i32) {
    %c0_i32 = arith.constant 0 : i32
    %c0_i32_0 = arith.constant 0 : i32
    %c0_i32_1 = arith.constant 0 : i32
    return %c0_i32, %c0_i32_0 : i32, i32
  }
  func.func @transform_5(%arg0: i32) -> (i32, i32) {
    %c0_i32 = arith.constant 0 : i32
    %c0_i32_0 = arith.constant 0 : i32
    %c0_i32_1 = arith.constant 0 : i32
    return %c0_i32, %c0_i32_0 : i32, i32
  }
  func.func @transform_6(%arg0: i32) -> (i32, i32) {
    %c0_i32 = arith.constant 0 : i32
    %c0_i32_0 = arith.constant 0 : i32
    %c0_i32_1 = arith.constant 0 : i32
    return %c0_i32, %c0_i32_0 : i32, i32
  }
}

</mosaic_0001>

<bundles_post_ra>
// kernel: tpu_custom_call.1
= control target key start
LH: loop header
LB: loop body
LE: loop exit
PB: predicated region body
PF: predicated region fallthrough
CT: control target
= control target key end

     0   :  { %11 = vsyncpa [#allocation3], 0  ;;  %s1391_s0 = inlined_call_operand.hbm [shape: bf16[32,128], index: 0, kind: input, shape index: {}]   ;;  %s1392_s1 = inlined_call_operand.hbm [shape: bf16[128,256], index: 1, kind: input, shape index: {}]   ;;  %s1393_s2 = inlined_call_operand.vmem [shape: f32[1,256], index: 2, kind: input, shape index: {}]   ;;  %s1394_s3 = inlined_call_operand.hbm [shape: bf16[128,128], index: 3, kind: input, shape index: {}]   ;;  %s1395_s4 = inlined_call_operand.hbm [shape: bf16[128,256], index: 4, kind: input, shape index: {}]   ;;  %s1396_s5 = inlined_call_operand.hbm [shape: bf16[128,128], index: 5, kind: input, shape index: {}]   ;;  %s1397_s6 = inlined_call_operand.hbm [shape: f32[32,128], index: 6, kind: output, shape index: {}]  }
   0x1   :  { %12 = vsyncpa [#allocation6], 0 }
   0x2   :  { %13 = vsyncpa [#allocation9], 0 }
   0x3   :  { %14 = vsyncpa [#allocation4], 0  ;;  %s1268_s21 = smov [#allocation5]  }
   0x4   :  { %s32_s22 = sshll.u32 %s1268_s21, 4  ;;  %s33_s22 = int_to_ptr.vmem [resolvable:$true] %s32_s22 }
   0x5   :  { %s1148_s23 = scalar_lea.vmem %s33_s22, 2048  ;;  %p1153_p1 = scmp.lt.s32.totalorder %s33_s22, %s33_s22 }
   0x6   :  { %p1149_p0 = scmp.ne.s32.totalorder %s33_s22, %s1148_s23  ;;  %p1154_p2 = scmp.lt.s32.totalorder %s1148_s23, %s1148_s23 }
   0x8   :  { %p1155_p3 = por %p1154_p2, %p1153_p1 }
   0xa   :  { %p1156_p4 = pnand %p1155_p3, %p1149_p0 }
   0xc   :  { %1159 = shalt.err (!%p1156_p4)
}
   0xd   :  { %s1269_s24 = smov 128   ;;  %s1270_s25 = smov 8  }
   0xe   :  { %38 = dma.hbm_to_vmem [thread:$0]  %s1392_s1, 2048, %s33_s22, [#allocation6], %s1269_s24, %s1269_s24, %s1270_s25  }
   0xf   :  { %s1271_s28 = smov [#allocation8]   ;;  %s1272_s30 = smov [#allocation2]  }
  0x10   :  { %s58_s29 = sshll.u32 %s1271_s28, 4  ;;  %s20_s7 = sshll.u32 %s1272_s30, 4  ;;  %s59_s29 = int_to_ptr.vmem [resolvable:$true] %s58_s29  ;;  %s21_s7 = int_to_ptr.vmem [resolvable:$true] %s20_s7 }
  0x11   :  { %s1168_s8 = scalar_lea.vmem %s59_s29, 2048  ;;  %p1173_p6 = scmp.lt.s32.totalorder %s59_s29, %s59_s29 }
  0x12   :  { %p1169_p5 = scmp.ne.s32.totalorder %s59_s29, %s1168_s8  ;;  %p1174_p7 = scmp.lt.s32.totalorder %s1168_s8, %s1168_s8 }
  0x14   :  { %p1175_p8 = por %p1174_p7, %p1173_p6 }
  0x16   :  { %p1176_p9 = pnand %p1175_p8, %p1169_p5 }
  0x18   :  { %1179 = shalt.err (!%p1176_p9)
}
  0x19   :  { %64 = dma.hbm_to_vmem [thread:$0]  %s1395_s4, 2048, %s59_s29, [#allocation9], %s1269_s24, %s1269_s24, %s1270_s25  }
  0x1a   :  { %s1188_s1 = scalar_lea.vmem %s21_s7, 256  ;;  %p1193_p11 = scmp.lt.s32.totalorder %s21_s7, %s21_s7 }
  0x1b   :  { %p1189_p10 = scmp.ne.s32.totalorder %s21_s7, %s1188_s1  ;;  %p1194_p12 = scmp.lt.s32.totalorder %s1188_s1, %s1188_s1 }
  0x1d   :  { %p1195_p13 = por %p1194_p12, %p1193_p11 }
  0x1f   :  { %p1196_p0 = pnand %p1195_p13, %p1189_p10 }
  0x21   :  { %1199 = shalt.err (!%p1196_p0)
}
  0x22   :  { %s1273_s11 = smov 64   ;;  %s1274_s12 = smov 4  }
  0x23   :  { %26 = dma.hbm_to_vmem [thread:$0]  %s1391_s0, 256, %s21_s7, [#allocation3], %s1273_s11, %s1273_s11, %s1274_s12  }
  0x24   :  { %s1275_s15 = smov [#allocation7]   ;;  %s1276_s17 = smov [#allocation10]  }
  0x25   :  { %s46_s16 = sshll.u32 %s1275_s15, 4  ;;  %s70_s18 = sshll.u32 %s1276_s17, 4  ;;  %s47_s16 = int_to_ptr.vmem [resolvable:$true] %s46_s16  ;;  %s71_s18 = int_to_ptr.vmem [resolvable:$true] %s70_s18 }
  0x26   :  { %s1208_s4 = scalar_lea.vmem %s47_s16, 1024  ;;  %p1213_p2 = scmp.lt.s32.totalorder %s47_s16, %s47_s16 }
  0x27   :  { %p1209_p1 = scmp.ne.s32.totalorder %s47_s16, %s1208_s4  ;;  %p1214_p3 = scmp.lt.s32.totalorder %s1208_s4, %s1208_s4 }
  0x29   :  { %p1215_p4 = por %p1214_p3, %p1213_p2 }
  0x2b   :  { %p1216_p5 = pnand %p1215_p4, %p1209_p1 }
  0x2d   :  { %1219 = shalt.err (!%p1216_p5)
}
  0x2e   :  { %52 = dma.hbm_to_vmem [thread:$0]  %s1394_s3, 1024, %s47_s16, [#allocation6], %s1273_s11, %s1273_s11, %s1274_s12  }
  0x2f   :  { %s1228_s21 = scalar_lea.vmem %s71_s18, 1024  ;;  %p1233_p7 = scmp.lt.s32.totalorder %s71_s18, %s71_s18 }
  0x30   :  { %p1229_p6 = scmp.ne.s32.totalorder %s71_s18, %s1228_s21  ;;  %p1234_p8 = scmp.lt.s32.totalorder %s1228_s21, %s1228_s21 }
  0x32   :  { %p1235_p9 = por %p1234_p8, %p1233_p7 }
  0x34   :  { %p1236_p10 = pnand %p1235_p9, %p1229_p6 }
  0x36   :  { %1239 = shalt.err (!%p1236_p10)
}
  0x37   :  { %76 = dma.hbm_to_vmem [thread:$0]  %s1396_s5, 1024, %s71_s18, [#allocation9], %s1273_s11, %s1273_s11, %s1274_s12  }
  0x38   :  { %1260 = dma.done.wait [#allocation3], 256  }
  0x39   :  { %1261 = vsyncadd [#allocation3], 4294967040 }
  0x3a   :  { %1262 = dma.done.wait [#allocation6], 3072  }
  0x3b   :  { %1263 = vsyncadd [#allocation6], 4294964224 }
  0x3c   :  { %1264 = dma.done.wait [#allocation9], 3072  }
  0x3d   :  { %1265 = vsyncadd [#allocation9], 4294964224  ;;  %v1277_v0 = vmov 0   ;;  %v1058_v1 = vld [vmem:[#allocation5 + $0x74] ss:$8 sps:$4 sm:$0xff]   ;;  %v1101_v16 = vld [vmem:[#allocation7 + $0x28] sm:$0xff]   ;;  %v115_v43 = vlaneseq }
  0x3e   :  { %249 = vmatprep.mubr.bf16.mxu0 %v1277_v0  ;;  %v1060_v2 = vld [vmem:[#allocation5 + $0x70] ss:$8 sps:$4 sm:$0xff]   ;;  %217 = vmatprep.subr.bf16.mxu0 %v1058_v1  ;;  %v1061_v3 = vld [vmem:[#allocation5 + $0x64] ss:$8 sps:$4 sm:$0xff]   ;;  %v1063_v4 = vld [vmem:[#allocation5 + $0x60] ss:$8 sps:$4 sm:$0xff]  }
  0x3f   :  { %218 = vmatpush1.bf16.msra.mxu0 %v1060_v2  ;;  %v1064_v5 = vld [vmem:[#allocation5 + $0x54] ss:$8 sps:$4 sm:$0xff]   ;;  %v1066_v6 = vld [vmem:[#allocation5 + $0x50] ss:$8 sps:$4 sm:$0xff]   ;;  %v1067_v7 = vld [vmem:[#allocation5 + $0x44] ss:$8 sps:$4 sm:$0xff]  }
  0x40   :  { %219 = vmatprep.subr.bf16.mxu0 %v1061_v3  ;;  %v1069_v8 = vld [vmem:[#allocation5 + $0x40] ss:$8 sps:$4 sm:$0xff]   ;;  %v1070_v9 = vld [vmem:[#allocation5 + $0x34] ss:$8 sps:$4 sm:$0xff]   ;;  %v1072_v10 = vld [vmem:[#allocation5 + $0x30] ss:$8 sps:$4 sm:$0xff]  }
  0x41   :  { %v1073_v11 = vld [vmem:[#allocation5 + $0x24] ss:$8 sps:$4 sm:$0xff]   ;;  %v1093_v12 = vld [vmem:[#allocation7 + $0x38] sm:$0xff]   ;;  %v1075_v13 = vld [vmem:[#allocation5 + $0x20] ss:$8 sps:$4 sm:$0xff]   ;;  %v116_v44 = vshrl.u32 %v115_v43, 7 }
  0x42   :  { %981 = vmatprep.subr.bf16.mxu1 %v1093_v12  ;;  %v1097_v14 = vld [vmem:[#allocation7 + $0x30] sm:$0xff]   ;;  %v1079_v18 = vld [vmem:[#allocation5 + $0x4] ss:$8 sps:$4 sm:$0xff]   ;;  %v1081_v20 = vld [vmem:[#allocation5] ss:$8 sps:$4 sm:$0xff]   ;;  %vm1279_vm0 = vmmov 0  }
  0x43   :  { %220 = vmatpush1.bf16.msra.mxu0 %v1063_v4  ;;  %v1076_v15 = vld [vmem:[#allocation5 + $0x14] ss:$8 sps:$4 sm:$0xff]   ;;  %982 = vmatpush3.bf16.msra.mxu1 %v1093_v12  ;;  %v1078_v17 = vld [vmem:[#allocation5 + $0x10] ss:$8 sps:$4 sm:$0xff]   ;;  %v1105_v19 = vld [vmem:[#allocation7 + $0x20] sm:$0xff]   ;;  %v117_v45 = vsub.s32 0, %v116_v44 }
  0x44   :  { %221 = vmatprep.subr.bf16.mxu0 %v1064_v5  ;;  %983 = vmatprep.subr.bf16.mxu1 %v1097_v14  ;;  %v1086_v21 = vld [vmem:[#allocation8 + $0x74] ss:$8 sps:$4 sm:$0xff]   ;;  %v1084_v23 = vld [vmem:[#allocation8 + $0x70] ss:$8 sps:$4 sm:$0xff]   ;;  %v1089_v24 = vld [vmem:[#allocation8 + $0x64] ss:$8 sps:$4 sm:$0xff]  }
  0x45   :  { %v1082_v22 = vld [vmem:[#allocation2] sm:$0xff]   ;;  %v1087_v25 = vld [vmem:[#allocation8 + $0x60] ss:$8 sps:$4 sm:$0xff]   ;;  %v1083_v27 = vld [vmem:[#allocation2 + $0x8] sm:$0xff]   ;;  %v121_v47 = vsub.s32 1, %v116_v44  ;;  %vm628_vm1 = vcmask 130048  }
  0x46   :  { %v1092_v26 = vld [vmem:[#allocation8 + $0x54] ss:$8 sps:$4 sm:$0xff]   ;;  %v1090_v28 = vld [vmem:[#allocation8 + $0x50] ss:$8 sps:$4 sm:$0xff]   ;;  %v1096_v29 = vld [vmem:[#allocation8 + $0x44] ss:$8 sps:$4 sm:$0xff]  }
  0x47   :  { %222 = vmatpush1.bf16.msra.mxu0 %v1066_v6  ;;  %984 = vmatpush3.bf16.msra.mxu1 %v1097_v14  ;;  %v1094_v30 = vld [vmem:[#allocation8 + $0x40] ss:$8 sps:$4 sm:$0xff]   ;;  %v1100_v31 = vld [vmem:[#allocation8 + $0x34] ss:$8 sps:$4 sm:$0xff]   ;;  %v1098_v32 = vld [vmem:[#allocation8 + $0x30] ss:$8 sps:$4 sm:$0xff]  }
  0x48   :  { %223 = vmatprep.subr.bf16.mxu0 %v1067_v7  ;;  %985 = vmatprep.subr.bf16.mxu1 %v1101_v16  ;;  %v1104_v33 = vld [vmem:[#allocation8 + $0x24] ss:$8 sps:$4 sm:$0xff]   ;;  %v1102_v34 = vld [vmem:[#allocation8 + $0x20] ss:$8 sps:$4 sm:$0xff]   ;;  %v1108_v35 = vld [vmem:[#allocation8 + $0x14] ss:$8 sps:$4 sm:$0xff]  }
  0x49   :  { %v1106_v36 = vld [vmem:[#allocation8 + $0x10] ss:$8 sps:$4 sm:$0xff]   ;;  %v1112_v38 = vld [vmem:[#allocation8 + $0x4] ss:$8 sps:$4 sm:$0xff]   ;;  %v1110_v39 = vld [vmem:[#allocation8] ss:$8 sps:$4 sm:$0xff]  }
  0x4a   :  { %v1109_v37 = vld [vmem:[#allocation7 + $0x18] sm:$0xff]   ;;  %v1113_v40 = vld [vmem:[#allocation7 + $0x10] sm:$0xff]   ;;  %v1114_v41 = vld [vmem:[#allocation7 + $0x8] sm:$0xff]   ;;  %v1278_v7 = vmov 0.0  }
  0x4b   :  { %224 = vmatpush1.bf16.msra.mxu0 %v1069_v8  ;;  %986 = vmatpush3.bf16.msra.mxu1 %v1101_v16  ;;  %v1115_v42 = vld [vmem:[#allocation7] sm:$0xff]   ;;  %v113_v46 = vld [vmem:[%s1393_s2] sm:$0x3]  ;;  %s1280_s2 = smov [#allocation11]  }
  0x4c   :  { %225 = vmatprep.subr.bf16.mxu0 %v1070_v9  ;;  %987 = vmatprep.subr.bf16.mxu1 %v1105_v19  ;;  %v118_v49 = vrot.slane %v113_v46, %v117_v45  ;;  %v122_v51 = vrot.slane %v113_v46, %v121_v47  ;;  %s887_s23 = sshll.u32 %s1280_s2, 4  ;;  %s888_s23 = int_to_ptr.vmem [resolvable:$true] %s887_s23 }
  0x4d   :  { %s1240_s26 = scalar_lea.vmem %s888_s23, 512  ;;  %p1245_p12 = scmp.lt.s32.totalorder %s888_s23, %s888_s23 }
  0x4e   :  { %p1241_p11 = scmp.ne.s32.totalorder %s888_s23, %s1240_s26  ;;  %p1246_p13 = scmp.lt.s32.totalorder %s1240_s26, %s1240_s26 }
  0x4f   :  { %226 = vmatpush1.bf16.msra.mxu0 %v1072_v10  ;;  %988 = vmatpush3.bf16.msra.mxu1 %v1105_v19 }
  0x50   :  { %227 = vmatprep.subr.bf16.mxu0 %v1073_v11  ;;  %989 = vmatprep.subr.bf16.mxu1 %v1109_v37  ;;  %p1247_p0 = por %p1246_p13, %p1245_p12 }
  0x52   :  { %p1248_p1 = pnand %p1247_p0, %p1241_p11 }
  0x53   :  { %228 = vmatpush1.bf16.msra.mxu0 %v1075_v13  ;;  %990 = vmatpush3.bf16.msra.mxu1 %v1109_v37 }
  0x54   :  { %229 = vmatprep.subr.bf16.mxu0 %v1076_v15  ;;  %991 = vmatprep.subr.bf16.mxu1 %v1113_v40 }
  0x57   :  { %230 = vmatpush1.bf16.msra.mxu0 %v1078_v17  ;;  %992 = vmatpush3.bf16.msra.mxu1 %v1113_v40 }
  0x58   :  { %231 = vmatprep.subr.bf16.mxu0 %v1079_v18  ;;  %993 = vmatprep.subr.bf16.mxu1 %v1114_v41 }
  0x5b   :  { %232 = vmatpush1.bf16.msra.mxu0 %v1081_v20  ;;  %994 = vmatpush3.bf16.msra.mxu1 %v1114_v41 }
  0x5c   :  { %483 = vmatprep.subr.bf16.mxu0 %v1086_v21  ;;  %995 = vmatprep.subr.bf16.mxu1 %v1115_v42 }
  0x5e   :  { %250 = vmatmul.mubr.bf16.vlgmr.msra.gmra.mxu0 %v1082_v22 }
  0x5f   :  { %259 = vmatprep.mubr.bf16.mxu0 %v1277_v0  ;;  %484 = vmatpush1.bf16.msra.mxu0 %v1084_v23 }
  0x60   :  { %485 = vmatprep.subr.bf16.mxu0 %v1089_v24  ;;  %996 = vmatpush3.bf16.msra.mxu1 %v1115_v42 }
  0x61   :  { %1001 = vmatprep.subr.bf16.mxu1 %v1278_v7 }
  0x63   :  { %486 = vmatpush1.bf16.msra.mxu0 %v1087_v25 }
  0x64   :  { %487 = vmatprep.subr.bf16.mxu0 %v1092_v26 }
  0x66   :  { %260 = vmatmul.mubr.bf16.gmra.mxu0 %v1083_v27 }
  0x67   :  { %488 = vmatpush1.bf16.msra.mxu0 %v1090_v28  ;;  %515 = vmatprep.mubr.bf16.mxu0 %v1277_v0 }
  0x68   :  { %489 = vmatprep.subr.bf16.mxu0 %v1096_v29 }
  0x6b   :  { %490 = vmatpush1.bf16.msra.mxu0 %v1094_v30 }
  0x6c   :  { %491 = vmatprep.subr.bf16.mxu0 %v1100_v31 }
  0x6f   :  { %492 = vmatpush1.bf16.msra.mxu0 %v1098_v32 }
  0x70   :  { %493 = vmatprep.subr.bf16.mxu0 %v1104_v33 }
  0x73   :  { %494 = vmatpush1.bf16.msra.mxu0 %v1102_v34 }
  0x74   :  { %495 = vmatprep.subr.bf16.mxu0 %v1108_v35 }
  0x77   :  { %496 = vmatpush1.bf16.msra.mxu0 %v1106_v36 }
  0x78   :  { %497 = vmatprep.subr.bf16.mxu0 %v1112_v38 }
  0x7b   :  { %498 = vmatpush1.bf16.msra.mxu0 %v1110_v39 }
 0x11e   :  { %v251_v48 = vpop.f32.mrf.mxu0 }
 0x11f   :  { %v252_v53 = vadd.f32 %v251_v48, %v118_v49 }
 0x120   :  { %v253_v50 = vpop.f32.mrf.mxu0 }
 0x121   :  { %v1343_v56 = vadd.f32 %v253_v50, %v122_v51 }
 0x122   :  { %v255_v52 = vpop.f32.mrf.mxu0 }
 0x123   :  { %v256_v54 = vadd.f32 %v255_v52, %v118_v49 }
 0x124   :  { %v257_v55 = vpop.f32.mrf.mxu0 }
 0x125   :  { %v272_v57 = vpack.c.bf16 %v256_v54, %v252_v53  ;;  %v1345_v58 = vadd.f32 %v257_v55, %v122_v51 }
 0x126   :  { %v261_v59 = vpop.f32.mrf.mxu0 }
 0x127   :  { %516 = vmatmul.mubr.bf16.vlgmr.msra.gmra.mxu0 %v272_v57  ;;  %v270_v60 = vpack.c.bf16 %v1345_v58, %v1343_v56  ;;  %v262_v63 = vadd.f32 %v261_v59, %v118_v49 }
 0x128   :  { %v263_v61 = vpop.f32.mrf.mxu0  ;;  %525 = vmatprep.mubr.bf16.mxu0 %v1277_v0 }
 0x129   :  { %997 = vmatprep.mubr.bf16.mxu1 %v270_v60  ;;  %v1350_v3 = vadd.f32 %v263_v61, %v122_v51  ;;  %v1116_v61 = vld [vmem:[#allocation10 + $0x38] sm:$0xff]  }
 0x12a   :  { %v265_v62 = vpop.f32.mrf.mxu0  ;;  %1025 = vmatprep.subr.bf16.mxu0 %v1116_v61 }
 0x12b   :  { %v266_v1 = vadd.f32 %v265_v62, %v118_v49  ;;  %v1117_v62 = vld [vmem:[#allocation10 + $0x30] sm:$0xff]   ;;  %1026 = vmatpush3.bf16.msra.mxu0 %v1116_v61 }
 0x12c   :  { %v267_v2 = vpop.f32.mrf.mxu0  ;;  %1027 = vmatprep.subr.bf16.mxu0 %v1117_v62 }
 0x12d   :  { %v273_v4 = vpack.c.bf16 %v266_v1, %v262_v63  ;;  %v1352_v5 = vadd.f32 %v267_v2, %v122_v51  ;;  %v1118_v63 = vld [vmem:[#allocation10 + $0x28] sm:$0xff]   ;;  %v1119_v1 = vld [vmem:[#allocation10 + $0x20] sm:$0xff]   ;;  %v1120_v2 = vld [vmem:[#allocation10 + $0x18] sm:$0xff]  }
 0x12f   :  { %v271_v6 = vpack.c.bf16 %v1352_v5, %v1350_v3  ;;  %526 = vmatmul.mubr.bf16.gmra.mxu0 %v273_v4 }
 0x130   :  { %1028 = vmatpush3.bf16.msra.mxu0 %v1117_v62 }
 0x131   :  { %998 = vmatmul.mubr.bf16.vlgmr.msra.gmra.mxu1 %v271_v6  ;;  %1029 = vmatprep.subr.bf16.mxu0 %v1118_v63 }
 0x132   :  { %1003 = vmatprep.mubr.msk.bf16.mxu1 %vm1279_vm0, %v1278_v7 }
 0x134   :  { %1030 = vmatpush3.bf16.msra.mxu0 %v1118_v63 }
 0x135   :  { %1031 = vmatprep.subr.bf16.mxu0 %v1119_v1 }
 0x138   :  { %1032 = vmatpush3.bf16.msra.mxu0 %v1119_v1 }
 0x139   :  { %1033 = vmatprep.subr.bf16.mxu0 %v1120_v2 }
 0x13c   :  { %1034 = vmatpush3.bf16.msra.mxu0 %v1120_v2 }
 0x1e7   :  { %v517_v0 = vpop.f32.mrf.mxu0 }
 0x1e9   :  { %v519_v8 = vpop.f32.mrf.mxu0 }
 0x1eb   :  { %v521_v9 = vpop.f32.mrf.mxu0 }
 0x1ec   :  { %v538_v10 = vpack.c.bf16 %v521_v9, %v517_v0 }
 0x1ed   :  { %v523_v11 = vpop.f32.mrf.mxu0 }
 0x1ee   :  { %1002 = vmatpush3.bf16.xpose.msra.mxu1 %v538_v10  ;;  %v540_v22 = vpack.c.bf16 %v523_v11, %v519_v8 }
 0x1ef   :  { %v527_v12 = vpop.f32.mrf.mxu0  ;;  %1007 = vmatprep.subr.bf16.mxu1 %v1278_v7 }
 0x1f1   :  { %v999_v13 = vpop.f32.mrf.mxu1  ;;  %v1360_v14 = vpop.f32.mrf.mxu0 }
 0x1f3   :  { %v372_v15 = vpop.f32.mrf.mxu1  ;;  %v531_v17 = vpop.f32.mrf.mxu0 }
 0x1f4   :  { %v539_v20 = vpack.c.bf16 %v531_v17, %v527_v12 }
 0x1f5   :  { %v1000_v16 = vpop.f32.mrf.mxu1  ;;  %v533_v11 = vpop.f32.mrf.mxu0 }
 0x1f6   :  { %v537_v21 = vpack.c.bf16 %v1000_v16, %v999_v13  ;;  %v541_v16 = vpack.c.bf16 %v533_v11, %v1360_v14  ;;  %v1123_v14 = vld [vmem:[#allocation10] sm:$0xff]  }
 0x1f7   :  { %v375_v18 = vpop.f32.mrf.mxu1 }
 0x1f8   :  { %v536_v19 = vpack.c.bf16 %v375_v18, %v372_v15 }
 0x1fa   :  { %1004 = vmatmul.mubr.bf16.vlgmr.msra.gmra.mxu1 %v536_v19 }
 0x1fb   :  { %1008 = vmatpush3.bf16.xpose.msra.mxu1 %v539_v20  ;;  %1009 = vmatprep.mubr.msk.bf16.mxu1 %vm1279_vm0, %v1278_v7 }
 0x1fc   :  { %1013 = vmatprep.subr.bf16.mxu1 %v1278_v7 }
 0x202   :  { %1010 = vmatmul.mubr.bf16.vlgmr.msra.gmra.mxu1 %v537_v21 }
 0x203   :  { %1014 = vmatpush3.bf16.msra.mxu1 %v540_v22  ;;  %1015 = vmatprep.mubr.msk.bf16.mxu1 %vm1279_vm0, %v1278_v7  ;;  %v1121_v22 = vld [vmem:[#allocation10 + $0x10] sm:$0xff]  }
 0x204   :  { %1019 = vmatprep.subr.bf16.mxu1 %v1278_v7  ;;  %1035 = vmatprep.subr.bf16.mxu0 %v1121_v22 }
 0x205   :  { %1036 = vmatpush3.bf16.msra.mxu0 %v1121_v22 }
 0x2ba   :  { %v576_v23 = vpop.f32.mrf.mxu1 }
 0x2bb   :  { %v624_v24 = vmul.f32 0.17677669, %v576_v23  ;;  %v1122_v23 = vld [vmem:[#allocation10 + $0x8] sm:$0xff]  }
 0x2bc   :  { %v1005_v25 = vpop.f32.mrf.mxu1  ;;  %1037 = vmatprep.subr.bf16.mxu0 %v1122_v23 }
 0x2bd   :  { %v629_v26 = vsel %vm628_vm1, %v624_v24, -inf  ;;  %1038 = vmatpush3.bf16.msra.mxu0 %v1122_v23 }
 0x2be   :  { %630 = vmax.xlane.f32.xlu0 %v629_v26  ;;  %v579_v27 = vpop.f32.mrf.mxu1  ;;  %1039 = vmatprep.subr.bf16.mxu0 %v1123_v14 }
 0x2bf   :  { %v625_v28 = vmul.f32 0.17677669, %v579_v27 }
 0x2c0   :  { %v1006_v29 = vpop.f32.mrf.mxu1 }
 0x2c1   :  { %v632_v30 = vsel %vm628_vm1, %v625_v28, -inf  ;;  %1040 = vmatpush3.bf16.msra.mxu0 %v1123_v14 }
 0x2c2   :  { %633 = vmax.xlane.f32.xlu0 %v632_v30  ;;  %v617_v31 = vpop.f32.mrf.mxu1 }
 0x2c3   :  { %v626_v32 = vmul.f32 0.17677669, %v617_v31 }
 0x2c4   :  { %v1011_v33 = vpop.f32.mrf.mxu1 }
 0x2c5   :  { %v635_v34 = vsel %vm628_vm1, %v626_v32, -inf }
 0x2c6   :  { %636 = vmax.xlane.f32.xlu1 %v635_v34  ;;  %v620_v35 = vpop.f32.mrf.mxu1 }
 0x2c7   :  { %v627_v36 = vmul.f32 0.17677669, %v620_v35 }
 0x2c8   :  { %v1012_v37 = vpop.f32.mrf.mxu1 }
 0x2c9   :  { %v638_v38 = vsel %vm628_vm1, %v627_v36, -inf }
 0x2ca   :  { %639 = vmax.xlane.f32.xlu1 %v638_v38 }
 0x347   :  { %v631_v39 = vpop.xlane.xlu0 %630 }
 0x348   :  { %v641_v40 = vsub.f32 %v624_v24, %v631_v39 }
 0x34a   :  { %v645_v41 = vmul.f32 1.442695, %v641_v40 }
 0x34b   :  { %v634_v42 = vpop.xlane.xlu0 %633 }
 0x34c   :  { %1124 = vpow2.f32 %v645_v41  ;;  %v642_v43 = vsub.f32 %v625_v28, %v634_v42 }
 0x34e   :  { %v647_v44 = vmul.f32 1.442695, %v642_v43 }
 0x34f   :  { %v637_v45 = vpop.xlane.xlu1 %636 }
 0x350   :  { %1126 = vpow2.f32 %v647_v44  ;;  %v643_v46 = vsub.f32 %v626_v32, %v637_v45 }
 0x352   :  { %v649_v47 = vmul.f32 1.442695, %v643_v46 }
 0x353   :  { %v640_v48 = vpop.xlane.xlu1 %639 }
 0x354   :  { %1128 = vpow2.f32 %v649_v47  ;;  %v644_v49 = vsub.f32 %v627_v36, %v640_v48 }
 0x356   :  { %v651_v50 = vmul.f32 1.442695, %v644_v49 }
 0x358   :  { %1130 = vpow2.f32 %v651_v50 }
 0x359   :  { %v1125_v51 = vpop.eup %1124 }
 0x35a   :  { %v653_v52 = vsel %vm628_vm1, %v1125_v51, 0.0 }
 0x35b   :  { %654 = vadd.xlane.f32.xlu0 %v653_v52 }
 0x35d   :  { %v1127_v53 = vpop.eup %1126 }
 0x35e   :  { %v656_v54 = vsel %vm628_vm1, %v1127_v53, 0.0 }
 0x35f   :  { %657 = vadd.xlane.f32.xlu1 %v656_v54 }
 0x361   :  { %v1129_v55 = vpop.eup %1128 }
 0x362   :  { %v659_v57 = vsel %vm628_vm1, %v1129_v55, 0.0 }
 0x363   :  { %660 = vadd.xlane.f32.xlu0 %v659_v57 }
 0x365   :  { %v1131_v59 = vpop.eup %1130 }
 0x366   :  { %v662_v60 = vsel %vm628_vm1, %v1131_v59, 0.0 }
 0x367   :  { %663 = vadd.xlane.f32.xlu1 %v662_v60 }
 0x3e4   :  { %v655_v4 = vpop.xlane.xlu0 %654 }
 0x3e5   :  { %1132 = vrcp.f32 %v655_v4 }
 0x3e8   :  { %v658_v6 = vpop.xlane.xlu1 %657 }
 0x3e9   :  { %1134 = vrcp.f32 %v658_v6 }
 0x3ec   :  { %v661_v0 = vpop.xlane.xlu0 %660 }
 0x3ed   :  { %1136 = vrcp.f32 %v661_v0 }
 0x3f0   :  { %v664_v8 = vpop.xlane.xlu1 %663 }
 0x3f1   :  { %1138 = vrcp.f32 %v664_v8 }
 0x3f2   :  { %v1133_v9 = vpop.eup %1132 }
 0x3f3   :  { %v669_v12 = vmul.f32 %v1133_v9, %v1125_v51 }
 0x3f6   :  { %v1135_v10 = vpop.eup %1134 }
 0x3f7   :  { %v670_v13 = vmul.f32 %v1135_v10, %v1127_v53 }
 0x3f9   :  { %v673_v15 = vpack.c.bf16 %v670_v13, %v669_v12 }
 0x3fa   :  { %v1137_v17 = vpop.eup %1136 }
 0x3fb   :  { %1016 = vmatmul.mubr.msk.bf16.vlgmr.msra.gmra.mxu1 %vm628_vm1, %v673_v15  ;;  %v671_v19 = vmul.f32 %v1137_v17, %v1129_v55 }
 0x3fc   :  { %1020 = vmatpush3.bf16.msra.mxu1 %v541_v16  ;;  %1021 = vmatprep.mubr.msk.bf16.mxu1 %vm1279_vm0, %v1278_v7 }
 0x3fe   :  { %v1139_v18 = vpop.eup %1138 }
 0x3ff   :  { %v672_v20 = vmul.f32 %v1139_v18, %v1131_v59 }
 0x401   :  { %v674_v21 = vpack.c.bf16 %v672_v20, %v671_v19 }
 0x403   :  { %1022 = vmatmul.mubr.msk.bf16.vlgmr.msra.gmra.mxu1 %vm628_vm1, %v674_v21 }
 0x4bb   :  { %v712_v24 = vpop.f32.mrf.mxu1 }
 0x4bd   :  { %v1017_v25 = vpop.f32.mrf.mxu1 }
 0x4bf   :  { %v715_v26 = vpop.f32.mrf.mxu1 }
 0x4c0   :  { %v763_v27 = vpack.c.bf16 %v715_v26, %v712_v24 }
 0x4c1   :  { %v1018_v7 = vpop.f32.mrf.mxu1 }
 0x4c2   :  { %1041 = vmatprep.mubr.bf16.mxu0 %v763_v27 }
 0x4c3   :  { %v756_v28 = vpop.f32.mrf.mxu1 }
 0x4c5   :  { %v1023_v29 = vpop.f32.mrf.mxu1 }
 0x4c7   :  { %v759_v30 = vpop.f32.mrf.mxu1 }
 0x4c8   :  { %v764_v31 = vpack.c.bf16 %v759_v30, %v756_v28 }
 0x4c9   :  { %v1024_v32 = vpop.f32.mrf.mxu1 }
 0x4ca   :  { %1042 = vmatmul.mubr.bf16.vlgmr.msra.gmra.mxu0 %v764_v31 }
 0x58a   :  { %v1043_v33 = vpop.f32.mrf.mxu0 }
 0x58b   :  { %v872_v34 = vadd.f32 %v1043_v33, %v1350_v3 }
 0x58c   :  { %v863_v35 = vpop.f32.mrf.mxu0 }
 0x58d   :  { %880 = vst [vmem:[#allocation11 + $0x10] sm:$0xff] %v872_v34  ;;  %v864_v36 = vadd.f32 %v863_v35, %v1343_v56 }
 0x58e   :  { %v1044_v37 = vpop.f32.mrf.mxu0 }
 0x58f   :  { %878 = vst [vmem:[#allocation11] sm:$0xff] %v864_v36  ;;  %v875_v38 = vadd.f32 %v1044_v37, %v1352_v5 }
 0x590   :  { %v866_v39 = vpop.f32.mrf.mxu0 }
 0x591   :  { %881 = vst [vmem:[#allocation11 + $0x18] sm:$0xff] %v875_v38  ;;  %v867_v40 = vadd.f32 %v866_v39, %v1345_v58 }
 0x593   :  { %879 = vst [vmem:[#allocation11 + $0x8] sm:$0xff] %v867_v40 }
 0x594   :  { %1251 = shalt.err (!%p1248_p1)
}
 0x595   :  { %893 = dma.vmem_to_hbm [thread:$0]  %s888_s23, 512, %s1397_s6, [#allocation4], %s1269_s24, %s1269_s24, %s1270_s25  }
 0x596   :  { %1266 = dma.done.wait [#allocation4], 512  }
 0x597   :  { %1267 = vsyncadd [#allocation4], 4294966784 }
 0x598   :  { %897 = vsyncpa [#allocation3], 1 }
 0x599   :  { %898 = vsyncpa [#allocation6], 1 }
 0x59a   :  { %899 = vsyncpa [#allocation9], 1 }
 0x59b   :  { %900 = vsyncpa [#allocation4], 1 }

</bundles_post_ra>
